<compile_context>
chip_gen: v7x
topology: tpu7x:2x2x1
jax: 0.10.0
libtpu: 0.0.40
codegen_flags: <defaults>
</compile_context>

<pallas_src>
import jax
import jax.numpy as jnp
from jax import lax
from jax.experimental import pallas as pl
from jax.experimental.pallas import tpu as pltpu


def _rec_kernel(idx_ref, sc_ref, sp_ref, out_ref):
    # idx_ref: (1, 2, TB) int32 VMEM -- lane-major ids for this batch tile
    #          (sublane 0 = customer id, sublane 1 = product id).
    # sc_ref:  (Nc,) f32 SMEM -- per-customer score = cust_emb @ w_c + bias.
    # sp_ref:  (Np,) f32 SMEM -- per-product  score = prod_emb @ w_p.
    # out_ref: (1, 1, TB) f32 VMEM -- lane-dense output slab for this tile.
    cidx = idx_ref[:, 0:1, :]          # (1, 1, TB) int32
    pidx = idx_ref[:, 1:2, :]          # (1, 1, TB) int32

    def gather_sum(lane_idx, tbl_ref, acc):
        # acc[lane] += tbl[lane_idx[lane]] via VPU compare+select over the
        # (small) score table; batch stays on the lane axis the whole time.
        def body(n, a):
            return a + jnp.where(lane_idx == n, tbl_ref[n], 0.0)
        return lax.fori_loop(0, tbl_ref.shape[0], body, acc, unroll=True)

    acc = jnp.zeros(out_ref.shape, jnp.float32)
    acc = gather_sum(cidx, sc_ref, acc)
    acc = gather_sum(pidx, sp_ref, acc)
    out_ref[...] = acc                 # single unmasked lane-dense store


def recommendation_forward(x_idx, cust_emb, prod_emb, w, b):
    """x_idx: (B, 2) integer ids; cust_emb: (Nc, E); prod_emb: (Np, E);
    w: (1, 2E) (PyTorch nn.Linear weight layout); b: (1,). Returns (B, 1) f32."""
    B = x_idx.shape[0]
    Nc, E = cust_emb.shape
    Np = prod_emb.shape[0]

    # ---- FC fold (done once, outside the kernel) ----------------------------
    wf = w.reshape(2 * E).astype(jnp.float32)
    scores_c = cust_emb.astype(jnp.float32) @ wf[:E] + b.astype(jnp.float32)[0]  # (Nc,)
    scores_p = prod_emb.astype(jnp.float32) @ wf[E:]                             # (Np,)

    # ---- Batch tiling --------------------------------------------------------
    b_pad128 = -(-B // 128) * 128
    TB = b_pad128 if b_pad128 <= 2048 else 1024   # one fat step for small B
    num_tiles = -(-B // TB)                       # >= 2 tiles when B is large (v7x 2 TCs)
    B_pad = num_tiles * TB

    # Lane-major fused index tensor; padded lanes reuse id 0 (a valid row) and
    # are sliced away after the call.  Reshape order (tile-major, then lane)
    # matches the final out.reshape(B_pad) below.
    cids = jnp.pad(x_idx[:, 0].astype(jnp.int32), (0, B_pad - B))
    pids = jnp.pad(x_idx[:, 1].astype(jnp.int32), (0, B_pad - B))
    idx = jnp.stack(
        [cids.reshape(num_tiles, TB), pids.reshape(num_tiles, TB)], axis=1
    )  # (num_tiles, 2, TB)

    out = pl.pallas_call(
        _rec_kernel,
        out_shape=jax.ShapeDtypeStruct((num_tiles, 1, TB), jnp.float32),
        grid=(num_tiles,),
        in_specs=[
            pl.BlockSpec((1, 2, TB), lambda t: (t, 0, 0)),        # fused ids (VMEM)
            pl.BlockSpec(memory_space=pltpu.MemorySpace.SMEM),    # customer scores
            pl.BlockSpec(memory_space=pltpu.MemorySpace.SMEM),    # product scores
        ],
        out_specs=pl.BlockSpec((1, 1, TB), lambda t: (t, 0, 0)),
        compiler_params=pltpu.CompilerParams(
            dimension_semantics=("parallel",)),
    )(idx, scores_c, scores_p)

    # (num_tiles, 1, TB) tile-major / lane-dense slab -> (B, 1)
    return out.reshape(B_pad)[:B].reshape(B, 1)


if __name__ == "__main__":
    num_customers, num_products, embed_dim = 16, 12, 32
    B = 8

    key = jax.random.PRNGKey(0)
    k1, k2, k3, k4, k5, k6 = jax.random.split(key, 6)

    # Deterministic synthetic parameters (same shapes as the nn.Module).
    cust_emb = jax.random.normal(k1, (num_customers, embed_dim), jnp.float32)
    prod_emb = jax.random.normal(k2, (num_products, embed_dim), jnp.float32)
    w = jax.random.normal(k3, (1, 2 * embed_dim), jnp.float32) * 0.1  # Linear(2E,1).weight
    b = jax.random.normal(k4, (1,), jnp.float32) * 0.1                # Linear(2E,1).bias

    cust_ids = jax.random.randint(k5, (B,), 0, num_customers, dtype=jnp.int32)
    prod_ids = jax.random.randint(k6, (B,), 0, num_products, dtype=jnp.int32)
    x = jnp.stack([cust_ids, prod_ids], axis=1)  # (B, 2) int32

    out = recommendation_forward(x, cust_emb, prod_emb, w, b)
    out = jax.block_until_ready(out)

    # Pure-JAX reference of the PyTorch forward.
    ce = cust_emb[x[:, 0]]
    pe = prod_emb[x[:, 1]]
    ref = jnp.concatenate([ce, pe], axis=1) @ w.T + b   # (B, 1)

    assert out.shape == (B, 1)
    assert jnp.allclose(out, ref, atol=1e-5, rtol=1e-5)
    print("KERNEL_OK")
</pallas_src>

<mosaic_0001>
module attributes {stable_mosaic.version = 11 : i64} {
  func.func @_rec_kernel(%arg0: i32, %arg1: memref<1x2x128xi32, #tpu.memory_space<vmem>>, %arg2: memref<16xf32, #tpu.memory_space<smem>>, %arg3: memref<12xf32, #tpu.memory_space<smem>>, %arg4: memref<1x1x128xf32, #tpu.memory_space<vmem>>) attributes {dimension_semantics = [#tpu.dimension_semantics<parallel>], iteration_bounds = array<i64: 1>, scalar_prefetch = 0 : i64, scratch_operands = 0 : i64, tpu.core_type = #tpu.core_type<tc>, window_params = [{transform_indices = @transform_0, window_bounds = array<i64: 1, 2, 128>}, {transform_indices = @transform_1, window_bounds = array<i64: 16>}, {transform_indices = @transform_2, window_bounds = array<i64: 12>}, {transform_indices = @transform_3, window_bounds = array<i64: 1, 1, 128>}]} {
    %c0 = arith.constant 0 : index
    %c0_0 = arith.constant 0 : index
    %c0_1 = arith.constant 0 : index
    %0 = vector.load %arg1[%c0, %c0_0, %c0_1] : memref<1x2x128xi32, #tpu.memory_space<vmem>>, vector<1x1x128xi32>
    %c0_2 = arith.constant 0 : index
    %c1 = arith.constant 1 : index
    %c0_3 = arith.constant 0 : index
    %1 = vector.load %arg1[%c0_2, %c1, %c0_3] : memref<1x2x128xi32, #tpu.memory_space<vmem>>, vector<1x1x128xi32>
    %cst = arith.constant 0.000000e+00 : f32
    %2 = vector.broadcast %cst : f32 to vector<1x1x128xf32>
    %c0_i32 = arith.constant 0 : i32
    %3 = vector.broadcast %c0_i32 : i32 to vector<1x1x128xi32>
    %4 = arith.cmpi eq, %0, %3 : vector<1x1x128xi32>
    %5 = arith.index_cast %c0_i32 : i32 to index
    %6 = memref.load %arg2[%5] : memref<16xf32, #tpu.memory_space<smem>>
    %cst_4 = arith.constant 0.000000e+00 : f32
    %7 = vector.broadcast %6 : f32 to vector<1x1x128xf32>
    %8 = vector.broadcast %cst_4 : f32 to vector<1x1x128xf32>
    %9 = arith.select %4, %7, %8 : vector<1x1x128xi1>, vector<1x1x128xf32>
    %10 = arith.addf %2, %9 : vector<1x1x128xf32>
    %c1_i32 = arith.constant 1 : i32
    %11 = vector.broadcast %c1_i32 : i32 to vector<1x1x128xi32>
    %12 = arith.cmpi eq, %0, %11 : vector<1x1x128xi32>
    %13 = arith.index_cast %c1_i32 : i32 to index
    %14 = memref.load %arg2[%13] : memref<16xf32, #tpu.memory_space<smem>>
    %cst_5 = arith.constant 0.000000e+00 : f32
    %15 = vector.broadcast %14 : f32 to vector<1x1x128xf32>
    %16 = vector.broadcast %cst_5 : f32 to vector<1x1x128xf32>
    %17 = arith.select %12, %15, %16 : vector<1x1x128xi1>, vector<1x1x128xf32>
    %18 = arith.addf %10, %17 : vector<1x1x128xf32>
    %c2_i32 = arith.constant 2 : i32
    %19 = vector.broadcast %c2_i32 : i32 to vector<1x1x128xi32>
    %20 = arith.cmpi eq, %0, %19 : vector<1x1x128xi32>
    %21 = arith.index_cast %c2_i32 : i32 to index
    %22 = memref.load %arg2[%21] : memref<16xf32, #tpu.memory_space<smem>>
    %cst_6 = arith.constant 0.000000e+00 : f32
    %23 = vector.broadcast %22 : f32 to vector<1x1x128xf32>
    %24 = vector.broadcast %cst_6 : f32 to vector<1x1x128xf32>
    %25 = arith.select %20, %23, %24 : vector<1x1x128xi1>, vector<1x1x128xf32>
    %26 = arith.addf %18, %25 : vector<1x1x128xf32>
    %c3_i32 = arith.constant 3 : i32
    %27 = vector.broadcast %c3_i32 : i32 to vector<1x1x128xi32>
    %28 = arith.cmpi eq, %0, %27 : vector<1x1x128xi32>
    %29 = arith.index_cast %c3_i32 : i32 to index
    %30 = memref.load %arg2[%29] : memref<16xf32, #tpu.memory_space<smem>>
    %cst_7 = arith.constant 0.000000e+00 : f32
    %31 = vector.broadcast %30 : f32 to vector<1x1x128xf32>
    %32 = vector.broadcast %cst_7 : f32 to vector<1x1x128xf32>
    %33 = arith.select %28, %31, %32 : vector<1x1x128xi1>, vector<1x1x128xf32>
    %34 = arith.addf %26, %33 : vector<1x1x128xf32>
    %c4_i32 = arith.constant 4 : i32
    %35 = vector.broadcast %c4_i32 : i32 to vector<1x1x128xi32>
    %36 = arith.cmpi eq, %0, %35 : vector<1x1x128xi32>
    %37 = arith.index_cast %c4_i32 : i32 to index
    %38 = memref.load %arg2[%37] : memref<16xf32, #tpu.memory_space<smem>>
    %cst_8 = arith.constant 0.000000e+00 : f32
    %39 = vector.broadcast %38 : f32 to vector<1x1x128xf32>
    %40 = vector.broadcast %cst_8 : f32 to vector<1x1x128xf32>
    %41 = arith.select %36, %39, %40 : vector<1x1x128xi1>, vector<1x1x128xf32>
    %42 = arith.addf %34, %41 : vector<1x1x128xf32>
    %c5_i32 = arith.constant 5 : i32
    %43 = vector.broadcast %c5_i32 : i32 to vector<1x1x128xi32>
    %44 = arith.cmpi eq, %0, %43 : vector<1x1x128xi32>
    %45 = arith.index_cast %c5_i32 : i32 to index
    %46 = memref.load %arg2[%45] : memref<16xf32, #tpu.memory_space<smem>>
    %cst_9 = arith.constant 0.000000e+00 : f32
    %47 = vector.broadcast %46 : f32 to vector<1x1x128xf32>
    %48 = vector.broadcast %cst_9 : f32 to vector<1x1x128xf32>
    %49 = arith.select %44, %47, %48 : vector<1x1x128xi1>, vector<1x1x128xf32>
    %50 = arith.addf %42, %49 : vector<1x1x128xf32>
    %c6_i32 = arith.constant 6 : i32
    %51 = vector.broadcast %c6_i32 : i32 to vector<1x1x128xi32>
    %52 = arith.cmpi eq, %0, %51 : vector<1x1x128xi32>
    %53 = arith.index_cast %c6_i32 : i32 to index
    %54 = memref.load %arg2[%53] : memref<16xf32, #tpu.memory_space<smem>>
    %cst_10 = arith.constant 0.000000e+00 : f32
    %55 = vector.broadcast %54 : f32 to vector<1x1x128xf32>
    %56 = vector.broadcast %cst_10 : f32 to vector<1x1x128xf32>
    %57 = arith.select %52, %55, %56 : vector<1x1x128xi1>, vector<1x1x128xf32>
    %58 = arith.addf %50, %57 : vector<1x1x128xf32>
    %c7_i32 = arith.constant 7 : i32
    %59 = vector.broadcast %c7_i32 : i32 to vector<1x1x128xi32>
    %60 = arith.cmpi eq, %0, %59 : vector<1x1x128xi32>
    %61 = arith.index_cast %c7_i32 : i32 to index
    %62 = memref.load %arg2[%61] : memref<16xf32, #tpu.memory_space<smem>>
    %cst_11 = arith.constant 0.000000e+00 : f32
    %63 = vector.broadcast %62 : f32 to vector<1x1x128xf32>
    %64 = vector.broadcast %cst_11 : f32 to vector<1x1x128xf32>
    %65 = arith.select %60, %63, %64 : vector<1x1x128xi1>, vector<1x1x128xf32>
    %66 = arith.addf %58, %65 : vector<1x1x128xf32>
    %c8_i32 = arith.constant 8 : i32
    %67 = vector.broadcast %c8_i32 : i32 to vector<1x1x128xi32>
    %68 = arith.cmpi eq, %0, %67 : vector<1x1x128xi32>
    %69 = arith.index_cast %c8_i32 : i32 to index
    %70 = memref.load %arg2[%69] : memref<16xf32, #tpu.memory_space<smem>>
    %cst_12 = arith.constant 0.000000e+00 : f32
    %71 = vector.broadcast %70 : f32 to vector<1x1x128xf32>
    %72 = vector.broadcast %cst_12 : f32 to vector<1x1x128xf32>
    %73 = arith.select %68, %71, %72 : vector<1x1x128xi1>, vector<1x1x128xf32>
    %74 = arith.addf %66, %73 : vector<1x1x128xf32>
    %c9_i32 = arith.constant 9 : i32
    %75 = vector.broadcast %c9_i32 : i32 to vector<1x1x128xi32>
    %76 = arith.cmpi eq, %0, %75 : vector<1x1x128xi32>
    %77 = arith.index_cast %c9_i32 : i32 to index
    %78 = memref.load %arg2[%77] : memref<16xf32, #tpu.memory_space<smem>>
    %cst_13 = arith.constant 0.000000e+00 : f32
    %79 = vector.broadcast %78 : f32 to vector<1x1x128xf32>
    %80 = vector.broadcast %cst_13 : f32 to vector<1x1x128xf32>
    %81 = arith.select %76, %79, %80 : vector<1x1x128xi1>, vector<1x1x128xf32>
    %82 = arith.addf %74, %81 : vector<1x1x128xf32>
    %c10_i32 = arith.constant 10 : i32
    %83 = vector.broadcast %c10_i32 : i32 to vector<1x1x128xi32>
    %84 = arith.cmpi eq, %0, %83 : vector<1x1x128xi32>
    %85 = arith.index_cast %c10_i32 : i32 to index
    %86 = memref.load %arg2[%85] : memref<16xf32, #tpu.memory_space<smem>>
    %cst_14 = arith.constant 0.000000e+00 : f32
    %87 = vector.broadcast %86 : f32 to vector<1x1x128xf32>
    %88 = vector.broadcast %cst_14 : f32 to vector<1x1x128xf32>
    %89 = arith.select %84, %87, %88 : vector<1x1x128xi1>, vector<1x1x128xf32>
    %90 = arith.addf %82, %89 : vector<1x1x128xf32>
    %c11_i32 = arith.constant 11 : i32
    %91 = vector.broadcast %c11_i32 : i32 to vector<1x1x128xi32>
    %92 = arith.cmpi eq, %0, %91 : vector<1x1x128xi32>
    %93 = arith.index_cast %c11_i32 : i32 to index
    %94 = memref.load %arg2[%93] : memref<16xf32, #tpu.memory_space<smem>>
    %cst_15 = arith.constant 0.000000e+00 : f32
    %95 = vector.broadcast %94 : f32 to vector<1x1x128xf32>
    %96 = vector.broadcast %cst_15 : f32 to vector<1x1x128xf32>
    %97 = arith.select %92, %95, %96 : vector<1x1x128xi1>, vector<1x1x128xf32>
    %98 = arith.addf %90, %97 : vector<1x1x128xf32>
    %c12_i32 = arith.constant 12 : i32
    %99 = vector.broadcast %c12_i32 : i32 to vector<1x1x128xi32>
    %100 = arith.cmpi eq, %0, %99 : vector<1x1x128xi32>
    %101 = arith.index_cast %c12_i32 : i32 to index
    %102 = memref.load %arg2[%101] : memref<16xf32, #tpu.memory_space<smem>>
    %cst_16 = arith.constant 0.000000e+00 : f32
    %103 = vector.broadcast %102 : f32 to vector<1x1x128xf32>
    %104 = vector.broadcast %cst_16 : f32 to vector<1x1x128xf32>
    %105 = arith.select %100, %103, %104 : vector<1x1x128xi1>, vector<1x1x128xf32>
    %106 = arith.addf %98, %105 : vector<1x1x128xf32>
    %c13_i32 = arith.constant 13 : i32
    %107 = vector.broadcast %c13_i32 : i32 to vector<1x1x128xi32>
    %108 = arith.cmpi eq, %0, %107 : vector<1x1x128xi32>
    %109 = arith.index_cast %c13_i32 : i32 to index
    %110 = memref.load %arg2[%109] : memref<16xf32, #tpu.memory_space<smem>>
    %cst_17 = arith.constant 0.000000e+00 : f32
    %111 = vector.broadcast %110 : f32 to vector<1x1x128xf32>
    %112 = vector.broadcast %cst_17 : f32 to vector<1x1x128xf32>
    %113 = arith.select %108, %111, %112 : vector<1x1x128xi1>, vector<1x1x128xf32>
    %114 = arith.addf %106, %113 : vector<1x1x128xf32>
    %c14_i32 = arith.constant 14 : i32
    %115 = vector.broadcast %c14_i32 : i32 to vector<1x1x128xi32>
    %116 = arith.cmpi eq, %0, %115 : vector<1x1x128xi32>
    %117 = arith.index_cast %c14_i32 : i32 to index
    %118 = memref.load %arg2[%117] : memref<16xf32, #tpu.memory_space<smem>>
    %cst_18 = arith.constant 0.000000e+00 : f32
    %119 = vector.broadcast %118 : f32 to vector<1x1x128xf32>
    %120 = vector.broadcast %cst_18 : f32 to vector<1x1x128xf32>
    %121 = arith.select %116, %119, %120 : vector<1x1x128xi1>, vector<1x1x128xf32>
    %122 = arith.addf %114, %121 : vector<1x1x128xf32>
    %c15_i32 = arith.constant 15 : i32
    %123 = vector.broadcast %c15_i32 : i32 to vector<1x1x128xi32>
    %124 = arith.cmpi eq, %0, %123 : vector<1x1x128xi32>
    %125 = arith.index_cast %c15_i32 : i32 to index
    %126 = memref.load %arg2[%125] : memref<16xf32, #tpu.memory_space<smem>>
    %cst_19 = arith.constant 0.000000e+00 : f32
    %127 = vector.broadcast %126 : f32 to vector<1x1x128xf32>
    %128 = vector.broadcast %cst_19 : f32 to vector<1x1x128xf32>
    %129 = arith.select %124, %127, %128 : vector<1x1x128xi1>, vector<1x1x128xf32>
    %130 = arith.addf %122, %129 : vector<1x1x128xf32>
    %c16_i32 = arith.constant 16 : i32
    %c0_i32_20 = arith.constant 0 : i32
    %131 = vector.broadcast %c0_i32_20 : i32 to vector<1x1x128xi32>
    %132 = arith.cmpi eq, %1, %131 : vector<1x1x128xi32>
    %133 = arith.index_cast %c0_i32_20 : i32 to index
    %134 = memref.load %arg3[%133] : memref<12xf32, #tpu.memory_space<smem>>
    %cst_21 = arith.constant 0.000000e+00 : f32
    %135 = vector.broadcast %134 : f32 to vector<1x1x128xf32>
    %136 = vector.broadcast %cst_21 : f32 to vector<1x1x128xf32>
    %137 = arith.select %132, %135, %136 : vector<1x1x128xi1>, vector<1x1x128xf32>
    %138 = arith.addf %130, %137 : vector<1x1x128xf32>
    %c1_i32_22 = arith.constant 1 : i32
    %139 = vector.broadcast %c1_i32_22 : i32 to vector<1x1x128xi32>
    %140 = arith.cmpi eq, %1, %139 : vector<1x1x128xi32>
    %141 = arith.index_cast %c1_i32_22 : i32 to index
    %142 = memref.load %arg3[%141] : memref<12xf32, #tpu.memory_space<smem>>
    %cst_23 = arith.constant 0.000000e+00 : f32
    %143 = vector.broadcast %142 : f32 to vector<1x1x128xf32>
    %144 = vector.broadcast %cst_23 : f32 to vector<1x1x128xf32>
    %145 = arith.select %140, %143, %144 : vector<1x1x128xi1>, vector<1x1x128xf32>
    %146 = arith.addf %138, %145 : vector<1x1x128xf32>
    %c2_i32_24 = arith.constant 2 : i32
    %147 = vector.broadcast %c2_i32_24 : i32 to vector<1x1x128xi32>
    %148 = arith.cmpi eq, %1, %147 : vector<1x1x128xi32>
    %149 = arith.index_cast %c2_i32_24 : i32 to index
    %150 = memref.load %arg3[%149] : memref<12xf32, #tpu.memory_space<smem>>
    %cst_25 = arith.constant 0.000000e+00 : f32
    %151 = vector.broadcast %150 : f32 to vector<1x1x128xf32>
    %152 = vector.broadcast %cst_25 : f32 to vector<1x1x128xf32>
    %153 = arith.select %148, %151, %152 : vector<1x1x128xi1>, vector<1x1x128xf32>
    %154 = arith.addf %146, %153 : vector<1x1x128xf32>
    %c3_i32_26 = arith.constant 3 : i32
    %155 = vector.broadcast %c3_i32_26 : i32 to vector<1x1x128xi32>
    %156 = arith.cmpi eq, %1, %155 : vector<1x1x128xi32>
    %157 = arith.index_cast %c3_i32_26 : i32 to index
    %158 = memref.load %arg3[%157] : memref<12xf32, #tpu.memory_space<smem>>
    %cst_27 = arith.constant 0.000000e+00 : f32
    %159 = vector.broadcast %158 : f32 to vector<1x1x128xf32>
    %160 = vector.broadcast %cst_27 : f32 to vector<1x1x128xf32>
    %161 = arith.select %156, %159, %160 : vector<1x1x128xi1>, vector<1x1x128xf32>
    %162 = arith.addf %154, %161 : vector<1x1x128xf32>
    %c4_i32_28 = arith.constant 4 : i32
    %163 = vector.broadcast %c4_i32_28 : i32 to vector<1x1x128xi32>
    %164 = arith.cmpi eq, %1, %163 : vector<1x1x128xi32>
    %165 = arith.index_cast %c4_i32_28 : i32 to index
    %166 = memref.load %arg3[%165] : memref<12xf32, #tpu.memory_space<smem>>
    %cst_29 = arith.constant 0.000000e+00 : f32
    %167 = vector.broadcast %166 : f32 to vector<1x1x128xf32>
    %168 = vector.broadcast %cst_29 : f32 to vector<1x1x128xf32>
    %169 = arith.select %164, %167, %168 : vector<1x1x128xi1>, vector<1x1x128xf32>
    %170 = arith.addf %162, %169 : vector<1x1x128xf32>
    %c5_i32_30 = arith.constant 5 : i32
    %171 = vector.broadcast %c5_i32_30 : i32 to vector<1x1x128xi32>
    %172 = arith.cmpi eq, %1, %171 : vector<1x1x128xi32>
    %173 = arith.index_cast %c5_i32_30 : i32 to index
    %174 = memref.load %arg3[%173] : memref<12xf32, #tpu.memory_space<smem>>
    %cst_31 = arith.constant 0.000000e+00 : f32
    %175 = vector.broadcast %174 : f32 to vector<1x1x128xf32>
    %176 = vector.broadcast %cst_31 : f32 to vector<1x1x128xf32>
    %177 = arith.select %172, %175, %176 : vector<1x1x128xi1>, vector<1x1x128xf32>
    %178 = arith.addf %170, %177 : vector<1x1x128xf32>
    %c6_i32_32 = arith.constant 6 : i32
    %179 = vector.broadcast %c6_i32_32 : i32 to vector<1x1x128xi32>
    %180 = arith.cmpi eq, %1, %179 : vector<1x1x128xi32>
    %181 = arith.index_cast %c6_i32_32 : i32 to index
    %182 = memref.load %arg3[%181] : memref<12xf32, #tpu.memory_space<smem>>
    %cst_33 = arith.constant 0.000000e+00 : f32
    %183 = vector.broadcast %182 : f32 to vector<1x1x128xf32>
    %184 = vector.broadcast %cst_33 : f32 to vector<1x1x128xf32>
    %185 = arith.select %180, %183, %184 : vector<1x1x128xi1>, vector<1x1x128xf32>
    %186 = arith.addf %178, %185 : vector<1x1x128xf32>
    %c7_i32_34 = arith.constant 7 : i32
    %187 = vector.broadcast %c7_i32_34 : i32 to vector<1x1x128xi32>
    %188 = arith.cmpi eq, %1, %187 : vector<1x1x128xi32>
    %189 = arith.index_cast %c7_i32_34 : i32 to index
    %190 = memref.load %arg3[%189] : memref<12xf32, #tpu.memory_space<smem>>
    %cst_35 = arith.constant 0.000000e+00 : f32
    %191 = vector.broadcast %190 : f32 to vector<1x1x128xf32>
    %192 = vector.broadcast %cst_35 : f32 to vector<1x1x128xf32>
    %193 = arith.select %188, %191, %192 : vector<1x1x128xi1>, vector<1x1x128xf32>
    %194 = arith.addf %186, %193 : vector<1x1x128xf32>
    %c8_i32_36 = arith.constant 8 : i32
    %195 = vector.broadcast %c8_i32_36 : i32 to vector<1x1x128xi32>
    %196 = arith.cmpi eq, %1, %195 : vector<1x1x128xi32>
    %197 = arith.index_cast %c8_i32_36 : i32 to index
    %198 = memref.load %arg3[%197] : memref<12xf32, #tpu.memory_space<smem>>
    %cst_37 = arith.constant 0.000000e+00 : f32
    %199 = vector.broadcast %198 : f32 to vector<1x1x128xf32>
    %200 = vector.broadcast %cst_37 : f32 to vector<1x1x128xf32>
    %201 = arith.select %196, %199, %200 : vector<1x1x128xi1>, vector<1x1x128xf32>
    %202 = arith.addf %194, %201 : vector<1x1x128xf32>
    %c9_i32_38 = arith.constant 9 : i32
    %203 = vector.broadcast %c9_i32_38 : i32 to vector<1x1x128xi32>
    %204 = arith.cmpi eq, %1, %203 : vector<1x1x128xi32>
    %205 = arith.index_cast %c9_i32_38 : i32 to index
    %206 = memref.load %arg3[%205] : memref<12xf32, #tpu.memory_space<smem>>
    %cst_39 = arith.constant 0.000000e+00 : f32
    %207 = vector.broadcast %206 : f32 to vector<1x1x128xf32>
    %208 = vector.broadcast %cst_39 : f32 to vector<1x1x128xf32>
    %209 = arith.select %204, %207, %208 : vector<1x1x128xi1>, vector<1x1x128xf32>
    %210 = arith.addf %202, %209 : vector<1x1x128xf32>
    %c10_i32_40 = arith.constant 10 : i32
    %211 = vector.broadcast %c10_i32_40 : i32 to vector<1x1x128xi32>
    %212 = arith.cmpi eq, %1, %211 : vector<1x1x128xi32>
    %213 = arith.index_cast %c10_i32_40 : i32 to index
    %214 = memref.load %arg3[%213] : memref<12xf32, #tpu.memory_space<smem>>
    %cst_41 = arith.constant 0.000000e+00 : f32
    %215 = vector.broadcast %214 : f32 to vector<1x1x128xf32>
    %216 = vector.broadcast %cst_41 : f32 to vector<1x1x128xf32>
    %217 = arith.select %212, %215, %216 : vector<1x1x128xi1>, vector<1x1x128xf32>
    %218 = arith.addf %210, %217 : vector<1x1x128xf32>
    %c11_i32_42 = arith.constant 11 : i32
    %219 = vector.broadcast %c11_i32_42 : i32 to vector<1x1x128xi32>
    %220 = arith.cmpi eq, %1, %219 : vector<1x1x128xi32>
    %221 = arith.index_cast %c11_i32_42 : i32 to index
    %222 = memref.load %arg3[%221] : memref<12xf32, #tpu.memory_space<smem>>
    %cst_43 = arith.constant 0.000000e+00 : f32
    %223 = vector.broadcast %222 : f32 to vector<1x1x128xf32>
    %224 = vector.broadcast %cst_43 : f32 to vector<1x1x128xf32>
    %225 = arith.select %220, %223, %224 : vector<1x1x128xi1>, vector<1x1x128xf32>
    %226 = arith.addf %218, %225 : vector<1x1x128xf32>
    %c12_i32_44 = arith.constant 12 : i32
    %c0_45 = arith.constant 0 : index
    %c0_46 = arith.constant 0 : index
    %c0_47 = arith.constant 0 : index
    %227 = vector.load %arg4[%c0_45, %c0_46, %c0_47] : memref<1x1x128xf32, #tpu.memory_space<vmem>>, vector<1x1x128xf32>
    tpu.vector_store %arg4[%c0_45, %c0_46, %c0_47], %226 {strides = array<i32>} : memref<1x1x128xf32, #tpu.memory_space<vmem>>, vector<1x1x128xf32>,
    return
  }
  func.func @transform_0(%arg0: i32) -> (i32, i32, i32) {
    %c0_i32 = arith.constant 0 : i32
    %c0_i32_0 = arith.constant 0 : i32
    %c0_i32_1 = arith.constant 0 : i32
    return %arg0, %c0_i32, %c0_i32_0 : i32, i32, i32
  }
  func.func @transform_1(%arg0: i32) -> i32 {
    %c0_i32 = arith.constant 0 : i32
    %c0_i32_0 = arith.constant 0 : i32
    return %c0_i32 : i32
  }
  func.func @transform_2(%arg0: i32) -> i32 {
    %c0_i32 = arith.constant 0 : i32
    %c0_i32_0 = arith.constant 0 : i32
    return %c0_i32 : i32
  }
  func.func @transform_3(%arg0: i32) -> (i32, i32, i32) {
    %c0_i32 = arith.constant 0 : i32
    %c0_i32_0 = arith.constant 0 : i32
    %c0_i32_1 = arith.constant 0 : i32
    return %arg0, %c0_i32, %c0_i32_0 : i32, i32, i32
  }
}

</mosaic_0001>

<bundles_post_ra>
// kernel: tpu_custom_call.1
= control target key start
LH: loop header
LB: loop body
LE: loop exit
PB: predicated region body
PF: predicated region fallthrough
CT: control target
= control target key end

     0   :  { %8 = vsyncpa [#allocation3], 0  ;;  %s404_s0 = inlined_call_operand.hbm [shape: s32[1,2,128], index: 0, kind: input, shape index: {}]   ;;  %s405_s1 = inlined_call_operand.vmem [shape: f32[16], index: 1, kind: input, shape index: {}]   ;;  %s406_s2 = inlined_call_operand.vmem [shape: f32[12], index: 2, kind: input, shape index: {}]   ;;  %s407_s3 = inlined_call_operand.hbm [shape: f32[1,1,128], index: 3, kind: output, shape index: {}]  }
   0x1   :  { %9 = vsyncpa [#allocation5], 0 }
   0x2   :  { %10 = vsyncpa [#allocation8], 0 }
   0x3   :  { %11 = vsyncpa [#allocation4], 0  ;;  %s28_s14 = sshll.u32 %s405_s1, 4  ;;  %s318_s15 = smov [#allocation2]   ;;  %s29_s14 = int_to_ptr.vmem [resolvable:$true] %s28_s14 }
   0x4   :  { %s18_s16 = sshll.u32 %s318_s15, 4  ;;  %s242_s19 = scalar_lea.hbm %s404_s0, 32  ;;  %s19_s16 = int_to_ptr.vmem [resolvable:$true] %s18_s16 }
   0x5   :  { %p243_p0 = scmp.ne.s32.totalorder %s404_s0, %s242_s19  ;;  %p246_p1 = scmp.lt.u32.totalorder %s242_s19, %s404_s0 }
   0x7   :  { %p248_p2 = pnand %p246_p1, %p243_p0 }
   0x9   :  { %251 = shalt.err (!%p248_p2)
}
   0xa   :  { %s252_s24 = scalar_lea.vmem %s19_s16, 32  ;;  %p257_p4 = scmp.lt.s32.totalorder %s19_s16, %s19_s16 }
   0xb   :  { %p253_p3 = scmp.ne.s32.totalorder %s19_s16, %s252_s24  ;;  %p258_p5 = scmp.lt.s32.totalorder %s252_s24, %s252_s24 }
   0xd   :  { %p259_p6 = por %p258_p5, %p257_p4 }
   0xf   :  { %p260_p7 = pnand %p259_p6, %p253_p3 }
  0x11   :  { %263 = shalt.err (!%p260_p7)
}
  0x12   :  { %21 = dma.hbm_to_vmem [thread:$0]  %s404_s0, 32, %s19_s16, [#allocation3]  }
  0x13   :  { %s264_s26 = scalar_lea.vmem %s29_s14, 16  ;;  %p269_p9 = scmp.lt.s32.totalorder %s29_s14, %s29_s14 }
  0x14   :  { %p265_p8 = scmp.ne.s32.totalorder %s29_s14, %s264_s26  ;;  %p270_p10 = scmp.lt.s32.totalorder %s264_s26, %s264_s26 }
  0x16   :  { %p271_p11 = por %p270_p10, %p269_p9 }
  0x18   :  { %p272_p12 = pnand %p271_p11, %p265_p8 }
  0x1a   :  { %275 = shalt.err (!%p272_p12)
}
  0x1b   :  { %s319_s27 = smov [#allocation6]   ;;  %s38_s30 = sshll.u32 %s406_s2, 4  ;;  %s39_s30 = int_to_ptr.vmem [resolvable:$true] %s38_s30 }
  0x1c   :  { %31 = dma.vmem_to_smem %s29_s14, 16, %s319_s27, [#allocation5]  }
  0x1d   :  { %s276_s4 = scalar_lea.vmem %s39_s30, 16  ;;  %p281_p0 = scmp.lt.s32.totalorder %s39_s30, %s39_s30 }
  0x1e   :  { %p277_p13 = scmp.ne.s32.totalorder %s39_s30, %s276_s4  ;;  %p282_p1 = scmp.lt.s32.totalorder %s276_s4, %s276_s4 }
  0x20   :  { %p283_p2 = por %p282_p1, %p281_p0 }
  0x22   :  { %p284_p3 = pnand %p283_p2, %p277_p13 }
  0x24   :  { %287 = shalt.err (!%p284_p3)
}
  0x25   :  { %s320_s0 = smov [#allocation7]  }
  0x26   :  { %41 = dma.vmem_to_smem %s39_s30, 16, %s320_s0, [#allocation8]  }
  0x27   :  { %310 = dma.done.wait [#allocation3], 32  }
  0x28   :  { %311 = vsyncadd [#allocation3], 4294967264 }
  0x29   :  { %312 = dma.done.wait [#allocation5], 16  }
  0x2a   :  { %313 = vsyncadd [#allocation5], 4294967280 }
  0x2b   :  { %314 = dma.done.wait [#allocation8], 16  }
  0x2c   :  { %315 = vsyncadd [#allocation8], 4294967280 }
  0x2d   :  { %51 = sfence }
  0x2e   :  { %s55_s5 = sld [smem:[#allocation6]]  ;;  %v360_v0 = vld [vmem:[#allocation2] sm:$0x1]  ;;  %s212_s2 = sld [smem:[#allocation6 + $0x1]]  ;;  %v377_v40 = vld [vmem:[#allocation2 + $0x1] sm:$0x1] }
  0x2f   :  { %s213_s6 = sld [smem:[#allocation6 + $0x2]]  ;;  %s214_s7 = sld [smem:[#allocation6 + $0x3]]  ;;  %vm54_vm0 = vcmp.eq.s32.totalorder %v360_v0, 0  ;;  %vm59_vm1 = vcmp.eq.s32.totalorder %v360_v0, 1  ;;  %vm64_vm2 = vcmp.eq.s32.totalorder %v360_v0, 2  ;;  %vm69_vm3 = vcmp.eq.s32.totalorder %v360_v0, 3 }
  0x30   :  { %s215_s8 = sld [smem:[#allocation6 + $0x4]]  ;;  %s216_s9 = sld [smem:[#allocation6 + $0x5]]  ;;  %vm74_vm4 = vcmp.eq.s32.totalorder %v360_v0, 4  ;;  %vm79_vm5 = vcmp.eq.s32.totalorder %v360_v0, 5  ;;  %vm84_vm6 = vcmp.eq.s32.totalorder %v360_v0, 6  ;;  %vm89_vm7 = vcmp.eq.s32.totalorder %v360_v0, 7 }
  0x31   :  { %s217_s10 = sld [smem:[#allocation6 + $0x6]]  ;;  %s218_s11 = sld [smem:[#allocation6 + $0x7]]  ;;  %vm94_vm8 = vcmp.eq.s32.totalorder %v360_v0, 8  ;;  %vm99_vm9 = vcmp.eq.s32.totalorder %v360_v0, 9  ;;  %vm104_vm10 = vcmp.eq.s32.totalorder %v360_v0, 10  ;;  %vm109_vm11 = vcmp.eq.s32.totalorder %v360_v0, 11 }
  0x32   :  { %s219_s12 = sld [smem:[#allocation6 + $0x8]]  ;;  %s220_s13 = sld [smem:[#allocation6 + $0x9]]  ;;  %vm114_vm12 = vcmp.eq.s32.totalorder %v360_v0, 12  ;;  %vm119_vm13 = vcmp.eq.s32.totalorder %v360_v0, 13  ;;  %vm124_vm14 = vcmp.eq.s32.totalorder %v360_v0, 14  ;;  %vm129_vm15 = vcmp.eq.s32.totalorder %v360_v0, 15 }
  0x33   :  { %s221_s14 = sld [smem:[#allocation6 + $0xa]]  ;;  %s222_s15 = sld [smem:[#allocation6 + $0xb]] }
  0x34   :  { %v56_v1 = vstv %s55_s5  ;;  %v61_v3 = vstv %s212_s2  ;;  %s223_s16 = sld [smem:[#allocation6 + $0xc]]  ;;  %s224_s17 = sld [smem:[#allocation6 + $0xd]] }
  0x35   :  { %v57_v2 = vsel %vm54_vm0, %v56_v1, 0.0  ;;  %v62_v4 = vsel %vm59_vm1, %v61_v3, 0.0  ;;  %v66_v5 = vstv %s213_s6  ;;  %v71_v6 = vstv %s214_s7  ;;  %s225_s18 = sld [smem:[#allocation6 + $0xe]]  ;;  %s226_s19 = sld [smem:[#allocation6 + $0xf]] }
  0x36   :  { %v63_v7 = vadd.f32 %v62_v4, %v57_v2  ;;  %v67_v8 = vsel %vm64_vm2, %v66_v5, 0.0  ;;  %v76_v9 = vstv %s215_s8  ;;  %v72_v10 = vsel %vm69_vm3, %v71_v6, 0.0  ;;  %s135_s20 = sld [smem:[#allocation7]]  ;;  %s227_s21 = sld [smem:[#allocation7 + $0x1]] }
  0x37   :  { %v81_v12 = vstv %s216_s9  ;;  %v77_v13 = vsel %vm74_vm4, %v76_v9, 0.0  ;;  %v86_v15 = vstv %s217_s10  ;;  %v91_v18 = vstv %s218_s11  ;;  %s228_s22 = sld [smem:[#allocation7 + $0x2]]  ;;  %s229_s23 = sld [smem:[#allocation7 + $0x3]] }
  0x38   :  { %v68_v11 = vadd.f32 %v67_v8, %v63_v7  ;;  %v82_v16 = vsel %vm79_vm5, %v81_v12, 0.0  ;;  %v87_v19 = vsel %vm84_vm6, %v86_v15, 0.0  ;;  %v96_v21 = vstv %s219_s12  ;;  %s230_s24 = sld [smem:[#allocation7 + $0x4]]  ;;  %s231_s1 = sld [smem:[#allocation7 + $0x5]] }
  0x39   :  { %v92_v22 = vsel %vm89_vm7, %v91_v18, 0.0  ;;  %v101_v24 = vstv %s220_s13  ;;  %v97_v25 = vsel %vm94_vm8, %v96_v21, 0.0  ;;  %v106_v27 = vstv %s221_s14  ;;  %s232_s25 = sld [smem:[#allocation7 + $0x6]]  ;;  %s233_s26 = sld [smem:[#allocation7 + $0x7]] }
  0x3a   :  { %v73_v14 = vadd.f32 %v72_v10, %v68_v11  ;;  %v102_v28 = vsel %vm99_vm9, %v101_v24, 0.0  ;;  %v111_v30 = vstv %s222_s15  ;;  %v107_v31 = vsel %vm104_vm10, %v106_v27, 0.0  ;;  %s234_s27 = sld [smem:[#allocation7 + $0x8]]  ;;  %s235_s28 = sld [smem:[#allocation7 + $0x9]] }
  0x3b   :  { %v116_v33 = vstv %s223_s16  ;;  %v112_v34 = vsel %vm109_vm11, %v111_v30, 0.0  ;;  %v121_v36 = vstv %s224_s17  ;;  %v126_v39 = vstv %s225_s18  ;;  %s236_s29 = sld [smem:[#allocation7 + $0xa]]  ;;  %s237_s30 = sld [smem:[#allocation7 + $0xb]] }
  0x3c   :  { %v78_v17 = vadd.f32 %v77_v13, %v73_v14  ;;  %v117_v37 = vsel %vm114_vm12, %v116_v33, 0.0  ;;  %v122_v41 = vsel %vm119_vm13, %v121_v36, 0.0  ;;  %v131_v43 = vstv %s226_s19  ;;  %s321_s4 = smov [#allocation9]  }
  0x3d   :  { %v127_v44 = vsel %vm124_vm14, %v126_v39, 0.0  ;;  %vm134_vm0 = vcmp.eq.s32.totalorder %v377_v40, 0  ;;  %v136_v46 = vstv %s135_s20  ;;  %v132_v47 = vsel %vm129_vm15, %v131_v43, 0.0  ;;  %s201_s0 = sshll.u32 %s321_s4, 4  ;;  %s202_s0 = int_to_ptr.vmem [resolvable:$true] %s201_s0 }
  0x3e   :  { %v83_v20 = vadd.f32 %v82_v16, %v78_v17  ;;  %vm139_vm1 = vcmp.eq.s32.totalorder %v377_v40, 1  ;;  %v141_v49 = vstv %s227_s21  ;;  %v137_v50 = vsel %vm134_vm0, %v136_v46, 0.0  ;;  %s288_s5 = scalar_lea.vmem %s202_s0, 16  ;;  %s292_s2 = scalar_lea.vmem %s202_s0, 32 }
  0x3f   :  { %vm144_vm2 = vcmp.eq.s32.totalorder %v377_v40, 2  ;;  %v146_v52 = vstv %s228_s22  ;;  %v142_v53 = vsel %vm139_vm1, %v141_v49, 0.0  ;;  %vm149_vm3 = vcmp.eq.s32.totalorder %v377_v40, 3  ;;  %p289_p4 = scmp.ne.s32.totalorder %s202_s0, %s288_s5  ;;  %p293_p5 = scmp.lt.s32.totalorder %s202_s0, %s202_s0 }
  0x40   :  { %v88_v23 = vadd.f32 %v87_v19, %v83_v20  ;;  %v151_v55 = vstv %s229_s23  ;;  %v147_v56 = vsel %vm144_vm2, %v146_v52, 0.0  ;;  %vm154_vm4 = vcmp.eq.s32.totalorder %v377_v40, 4  ;;  %p294_p6 = scmp.lt.s32.totalorder %s292_s2, %s288_s5 }
  0x41   :  { %v156_v58 = vstv %s230_s24  ;;  %v152_v59 = vsel %vm149_vm3, %v151_v55, 0.0  ;;  %vm159_vm5 = vcmp.eq.s32.totalorder %v377_v40, 5  ;;  %v161_v61 = vstv %s231_s1 }
  0x42   :  { %v93_v26 = vadd.f32 %v92_v22, %v88_v23  ;;  %v157_v62 = vsel %vm154_vm4, %v156_v58, 0.0  ;;  %vm164_vm6 = vcmp.eq.s32.totalorder %v377_v40, 6  ;;  %v166_v0 = vstv %s232_s25  ;;  %p295_p7 = por %p294_p6, %p293_p5 }
  0x43   :  { %v162_v1 = vsel %vm159_vm5, %v161_v61, 0.0  ;;  %vm169_vm7 = vcmp.eq.s32.totalorder %v377_v40, 7  ;;  %v171_v3 = vstv %s233_s26  ;;  %v167_v4 = vsel %vm164_vm6, %v166_v0, 0.0 }
  0x44   :  { %v98_v29 = vadd.f32 %v97_v25, %v93_v26  ;;  %vm174_vm8 = vcmp.eq.s32.totalorder %v377_v40, 8  ;;  %v176_v6 = vstv %s234_s27  ;;  %v172_v7 = vsel %vm169_vm7, %v171_v3, 0.0  ;;  %p296_p8 = pnand %p295_p7, %p289_p4 }
  0x45   :  { %vm179_vm9 = vcmp.eq.s32.totalorder %v377_v40, 9  ;;  %v181_v9 = vstv %s235_s28  ;;  %v177_v10 = vsel %vm174_vm8, %v176_v6, 0.0  ;;  %vm184_vm10 = vcmp.eq.s32.totalorder %v377_v40, 10 }
  0x46   :  { %v103_v32 = vadd.f32 %v102_v28, %v98_v29  ;;  %v186_v12 = vstv %s236_s29  ;;  %v182_v13 = vsel %vm179_vm9, %v181_v9, 0.0  ;;  %vm189_vm11 = vcmp.eq.s32.totalorder %v377_v40, 11 }
  0x47   :  { %v191_v15 = vstv %s237_s30  ;;  %v187_v16 = vsel %vm184_vm10, %v186_v12, 0.0 }
  0x48   :  { %v108_v35 = vadd.f32 %v107_v31, %v103_v32  ;;  %v192_v18 = vsel %vm189_vm11, %v191_v15, 0.0 }
  0x4a   :  { %v113_v38 = vadd.f32 %v112_v34, %v108_v35 }
  0x4c   :  { %v118_v42 = vadd.f32 %v117_v37, %v113_v38 }
  0x4e   :  { %v123_v45 = vadd.f32 %v122_v41, %v118_v42 }
  0x50   :  { %v128_v48 = vadd.f32 %v127_v44, %v123_v45 }
  0x52   :  { %v133_v51 = vadd.f32 %v132_v47, %v128_v48 }
  0x54   :  { %v138_v54 = vadd.f32 %v137_v50, %v133_v51 }
  0x56   :  { %v143_v57 = vadd.f32 %v142_v53, %v138_v54 }
  0x58   :  { %v148_v60 = vadd.f32 %v147_v56, %v143_v57 }
  0x5a   :  { %v153_v63 = vadd.f32 %v152_v59, %v148_v60 }
  0x5c   :  { %v158_v2 = vadd.f32 %v157_v62, %v153_v63 }
  0x5e   :  { %v163_v5 = vadd.f32 %v162_v1, %v158_v2 }
  0x60   :  { %v168_v8 = vadd.f32 %v167_v4, %v163_v5 }
  0x62   :  { %v173_v11 = vadd.f32 %v172_v7, %v168_v8 }
  0x64   :  { %v178_v14 = vadd.f32 %v177_v10, %v173_v11 }
  0x66   :  { %v183_v17 = vadd.f32 %v182_v13, %v178_v14 }
  0x68   :  { %v188_v19 = vadd.f32 %v187_v16, %v183_v17 }
  0x6a   :  { %v193_v20 = vadd.f32 %v192_v18, %v188_v19 }
  0x6c   :  { %194 = vst [vmem:[#allocation9] sm:$0x1] %v193_v20 }
  0x6d   :  { %299 = shalt.err (!%p296_p8)
}
  0x6e   :  { %s300_s8 = scalar_lea.hbm %s407_s3, 16 }
  0x6f   :  { %p301_p9 = scmp.ne.s32.totalorder %s407_s3, %s300_s8  ;;  %p304_p10 = scmp.lt.u32.totalorder %s300_s8, %s407_s3 }
  0x71   :  { %p306_p11 = pnand %p304_p10, %p301_p9 }
  0x73   :  { %309 = shalt.err (!%p306_p11)
}
  0x74   :  { %204 = dma.vmem_to_hbm [thread:$0]  %s202_s0, 16, %s407_s3, [#allocation4]  }
  0x75   :  { %316 = dma.done.wait [#allocation4], 16  }
  0x76   :  { %317 = vsyncadd [#allocation4], 4294967280 }
  0x77   :  { %208 = vsyncpa [#allocation3], 1 }
  0x78   :  { %209 = vsyncpa [#allocation4], 1 }
  0x79   :  { %210 = vsyncpa [#allocation5], 1 }
  0x7a   :  { %211 = vsyncpa [#allocation8], 1 }

</bundles_post_ra>
